<compile_context>
chip_gen: v7x
topology: tpu7x:2x2x1
jax: 0.10.0
libtpu: 0.0.40
codegen_flags: <defaults>
</compile_context>

<pallas_src>
import math

import jax
import jax.numpy as jnp
from jax.experimental import pallas as pl
from jax.experimental.pallas import tpu as pltpu


# --------------------------------------------------------------------------------------
# Pass 1: per-(sample, channel) sum / sum-of-squares for InstanceNorm2d (tiled reduction)
# --------------------------------------------------------------------------------------

def _stats_kernel(x_ref, s_ref):
    @pl.when(pl.program_id(1) == 0)
    def _init():
        s_ref[...] = jnp.zeros_like(s_ref)
    x = x_ref[...]                                        # (Mt, C) f32
    s1 = jnp.sum(x, axis=0, keepdims=True)
    s2 = jnp.sum(x * x, axis=0, keepdims=True)
    s_ref[...] += jnp.concatenate([s1, s2], axis=0)       # (2, C)


def _instance_norm_stats(x, row_tile=128):
    """x: (N, H, W, C) f32 -> (mean, inv_std), each (N, C)."""
    N, H, W, C = x.shape
    HW = H * W
    Mt = row_tile if (HW > row_tile and HW % row_tile == 0) else HW
    x3 = x.reshape(N, HW, C)
    sums = pl.pallas_call(
        _stats_kernel,
        out_shape=jax.ShapeDtypeStruct((N, 2, C), jnp.float32),
        grid=(N, HW // Mt),
        in_specs=[pl.BlockSpec((None, Mt, C), lambda n, t: (n, t, 0))],
        out_specs=pl.BlockSpec((None, 2, C), lambda n, t: (n, 0, 0)),
        compiler_params=pltpu.CompilerParams(
            dimension_semantics=("parallel", "arbitrary")),
    )(x3)
    mean = sums[:, 0, :] * (1.0 / HW)
    var = sums[:, 1, :] * (1.0 / HW) - mean * mean        # biased var (InstanceNorm2d)
    inv_std = jax.lax.rsqrt(var + 1e-5)
    return mean, inv_std


# --------------------------------------------------------------------------------------
# Pass 2: [instance-norm scale/shift -> PReLU ->] KHxKW "same" conv as KH banded matmuls
# --------------------------------------------------------------------------------------

def _make_conv_kernel(apply_norm, KH, Ht, H, ph, Hp):
    Htot = Ht + KH - 1

    def body(norm_ref, w_ref, b_ref, x_hbm, o_ref, xbuf, sem):
        n = pl.program_id(0)
        r = pl.program_id(1)
        # Fetch this tile's (Ht + KH - 1)-row halo window of the padded input from HBM.
        row0 = n * Hp + r * Ht
        cp = pltpu.make_async_copy(x_hbm.at[pl.ds(row0, Htot), :], xbuf, sem.at[0])
        cp.start()
        cp.wait()
        x = xbuf[...]                                     # (Htot, Wp*Cin) f32

        if apply_norm:
            scale = norm_ref[0:1, :]                      # inv_std (0 on padded columns)
            shift = norm_ref[1:2, :]                      # -mean*inv_std (0 on pad cols)
            alpha = norm_ref[2:3, :]                      # PReLU slope
            x = x * scale + shift                         # padded columns become 0
            x = jnp.where(x >= 0.0, x, alpha * x)         # PReLU
            # Re-zero the row padding ring post-activation so the conv sees the same
            # zero padding that nn.Conv2d(padding=KH//2) applies.
            arow = r * Ht + jax.lax.broadcasted_iota(jnp.int32, (Htot, 1), 0)
            rvalid = jnp.logical_and(arow >= ph, arow < H + ph)
            x = jnp.where(rvalid, x, 0.0)

        # KH banded matmuls: K = Wp*Cin, N = W*Cout (lane dense), f32 accumulation,
        # default (native MXU) precision.
        acc = jnp.dot(x[0:Ht, :], w_ref[0], preferred_element_type=jnp.float32)
        for dy in range(1, KH):
            acc = acc + jnp.dot(x[dy:dy + Ht, :], w_ref[dy],
                                preferred_element_type=jnp.float32)
        o_ref[...] = acc + b_ref[...]

    if apply_norm:
        return body

    def kernel_no_norm(w_ref, b_ref, x_hbm, o_ref, xbuf, sem):
        return body(None, w_ref, b_ref, x_hbm, o_ref, xbuf, sem)

    return kernel_no_norm


def conv_block_pallas(x, w, b, alpha, *, apply_norm, row_tile=8):
    """x: (N, H, W, Cin) f32; w: (KH, KW, Cin, Cout); b: (Cout,); alpha: (Cin,)."""
    N, H, W, Cin = x.shape
    KH, KW, _, Cout = w.shape
    ph, pw = KH // 2, KW // 2
    Hp, Wp = H + KH - 1, W + KW - 1
    Ht = row_tile if (H > row_tile and H % row_tile == 0) else H
    n_rt = H // Ht
    Htot = Ht + KH - 1
    WpC = Wp * Cin
    WCo = W * Cout

    # Zero-padded input in row-flat layout (N*Hp, Wp*Cin); stays in HBM (pl.ANY).
    xflat = jnp.pad(x, ((0, 0), (ph, ph), (pw, pw), (0, 0))).reshape(N * Hp, WpC)

    # Banded (block-Toeplitz) weights: for each kernel row dy a (Wp*Cin, W*Cout) matrix
    # whose output-column block w holds w[dy] at K-row offset w*Cin. This folds the
    # KW*Cin taps into the matmul contraction dimension.
    wrow = w.reshape(KH, KW * Cin, Cout)
    wband = jnp.concatenate(
        [jnp.pad(wrow, ((0, 0), (wc * Cin, (W - 1 - wc) * Cin), (0, 0)))
         for wc in range(W)], axis=2)                     # (KH, Wp*Cin, W*Cout)
    b_row = jnp.tile(b, W).reshape(1, WCo)

    in_arrays = []
    in_specs = []
    if apply_norm:
        mean, inv_std = _instance_norm_stats(x)
        colmask = ((jnp.arange(Wp) >= pw) & (jnp.arange(Wp) < W + pw)
                   ).astype(jnp.float32)                  # (Wp,)
        scale = (inv_std[:, None, :] * colmask[None, :, None]).reshape(N, WpC)
        shift = ((-mean * inv_std)[:, None, :] * colmask[None, :, None]).reshape(N, WpC)
        alpha_row = jnp.broadcast_to(alpha[None, None, :], (N, Wp, Cin)).reshape(N, WpC)
        norm_row = jnp.stack([scale, shift, alpha_row], axis=1)     # (N, 3, Wp*Cin)
        in_arrays.append(norm_row)
        in_specs.append(pl.BlockSpec((None, 3, WpC), lambda n, r: (n, 0, 0)))

    in_arrays += [wband, b_row, xflat]
    in_specs += [
        pl.BlockSpec((KH, WpC, WCo), lambda n, r: (0, 0, 0)),   # resident in VMEM
        pl.BlockSpec((1, WCo), lambda n, r: (0, 0)),
        pl.BlockSpec(memory_space=pl.ANY),                      # raw HBM; manual halo DMA
    ]

    out = pl.pallas_call(
        _make_conv_kernel(apply_norm, KH, Ht, H, ph, Hp),
        out_shape=jax.ShapeDtypeStruct((N, H, WCo), jnp.float32),
        grid=(N, n_rt),
        in_specs=in_specs,
        out_specs=pl.BlockSpec((None, Ht, WCo), lambda n, r: (n, r, 0)),
        scratch_shapes=[pltpu.VMEM((Htot, WpC), jnp.float32),
                        pltpu.SemaphoreType.DMA((1,))],
        compiler_params=pltpu.CompilerParams(
            dimension_semantics=("parallel", "parallel")),
    )(*in_arrays)
    return out.reshape(N, H, W, Cout)


# ---------------- plain-JAX glue (data movement only) ----------------

def _avg_pool2(x):  # nn.AvgPool2d(2)
    N, H, W, C = x.shape
    return x.reshape(N, H // 2, 2, W // 2, 2, C).mean(axis=(2, 4))


def _upsample2_nearest(x):  # nn.Upsample(scale_factor=2, mode="nearest")
    return jnp.repeat(jnp.repeat(x, 2, axis=1), 2, axis=2)


# ---------------- parameters ----------------

def init_unet_params(key, in_features, down, up, size):
    if len(down) != len(up) + 1:
        raise ValueError("`down` must be 1 item longer than `up`")

    def conv_init(k, cin, cout):
        kw, kb = jax.random.split(k)
        bound = 1.0 / math.sqrt(cin * size * size)
        w = jax.random.uniform(kw, (size, size, cin, cout), jnp.float32, -bound, bound)
        b = jax.random.uniform(kb, (cout,), jnp.float32, -bound, bound)
        return w, b

    params = {"down": [], "up": []}
    down_dims = [in_features, *down]
    keys = jax.random.split(key, len(down) + len(up))
    ki = 0
    for i, (d_in, d_out) in enumerate(zip(down_dims[:-1], down_dims[1:])):
        w, b = conv_init(keys[ki], d_in, d_out)
        ki += 1
        params["down"].append({
            "w": w, "b": b,
            "alpha": jnp.full((d_in,), 0.25, jnp.float32),  # PReLU default init
            "is_first": i == 0,
        })
    bot_dims = [down[-1], *up]
    hor_dims = down_dims[-2::-1]
    for d_bot, d_hor, d_out in zip(bot_dims, hor_dims, up):
        cin = d_bot + d_hor
        w, b = conv_init(keys[ki], cin, d_out)
        ki += 1
        params["up"].append({
            "w": w, "b": b,
            "alpha": jnp.full((cin,), 0.25, jnp.float32),
        })
    return params


# ---------------- forward passes ----------------

def unet_forward_pallas(x_nchw, params):
    x = jnp.transpose(x_nchw, (0, 2, 3, 1)).astype(jnp.float32)  # NCHW -> NHWC
    features = [x]
    for p in params["down"]:
        h = features[-1]
        if not p["is_first"]:
            h = _avg_pool2(h)
        features.append(conv_block_pallas(h, p["w"], p["b"], p["alpha"],
                                          apply_norm=not p["is_first"]))
    f_bot = features[-1]
    for p, f_hor in zip(params["up"], features[-2::-1]):
        up_bot = _upsample2_nearest(f_bot)
        combined = jnp.concatenate([up_bot, f_hor], axis=-1)  # [bottom, horizontal]
        f_bot = conv_block_pallas(combined, p["w"], p["b"], p["alpha"], apply_norm=True)
    return jnp.transpose(f_bot, (0, 3, 1, 2))  # NHWC -> NCHW


def _conv_block_ref(x, w, b, alpha, apply_norm):
    if apply_norm:
        mean = x.mean(axis=(1, 2), keepdims=True)
        var = ((x - mean) ** 2).mean(axis=(1, 2), keepdims=True)
        x = (x - mean) / jnp.sqrt(var + 1e-5)
        x = jnp.where(x >= 0.0, x, alpha.reshape(1, 1, 1, -1) * x)
    y = jax.lax.conv_general_dilated(
        x, w, window_strides=(1, 1), padding="SAME",
        dimension_numbers=("NHWC", "HWIO", "NHWC"),
        precision=jax.lax.Precision.HIGHEST)
    return y + b.reshape(1, 1, 1, -1)


def unet_forward_ref(x_nchw, params):
    x = jnp.transpose(x_nchw, (0, 2, 3, 1)).astype(jnp.float32)
    features = [x]
    for p in params["down"]:
        h = features[-1]
        if not p["is_first"]:
            h = _avg_pool2(h)
        features.append(_conv_block_ref(h, p["w"], p["b"], p["alpha"],
                                        apply_norm=not p["is_first"]))
    f_bot = features[-1]
    for p, f_hor in zip(params["up"], features[-2::-1]):
        up_bot = _upsample2_nearest(f_bot)
        combined = jnp.concatenate([up_bot, f_hor], axis=-1)
        f_bot = _conv_block_ref(combined, p["w"], p["b"], p["alpha"], apply_norm=True)
    return jnp.transpose(f_bot, (0, 3, 1, 2))


if __name__ == "__main__":
    # Unet(in_features=1, down=[8, 16], up=[16], size=5) at small spatial size.
    in_features, down, up, size = 1, [8, 16], [16], 5
    params = init_unet_params(jax.random.PRNGKey(0), in_features, down, up, size)
    x = jax.random.normal(jax.random.PRNGKey(1), (2, in_features, 16, 16), jnp.float32)

    out = jax.block_until_ready(unet_forward_pallas(x, params))
    ref = unet_forward_ref(x, params)

    assert out.shape == (2, up[-1], 16, 16), out.shape
    # Tolerance widened vs rev 1: the kernel now uses native-MXU (default precision)
    # matmuls instead of Precision.HIGHEST f32 emulation, while the reference stays
    # at HIGHEST. Real bugs (wrong taps/offsets) produce O(1) errors.
    if not jnp.allclose(out, ref, atol=2e-2, rtol=2e-2):
        raise AssertionError(f"mismatch, max abs err = {jnp.max(jnp.abs(out - ref))}")
    print("KERNEL_OK")
</pallas_src>

<mosaic_0001>
module attributes {stable_mosaic.version = 11 : i64} {
  func.func @kernel_no_norm(%arg0: i32, %arg1: i32, %arg2: memref<5x20x128xf32, #tpu.memory_space<vmem>>, %arg3: memref<1x128xf32, #tpu.memory_space<vmem>>, %arg4: memref<40x20xf32, #tpu.memory_space<any>>, %arg5: memref<1x8x128xf32, #tpu.memory_space<vmem>>, %arg6: memref<12x20xf32, #tpu.memory_space<vmem>>, %arg7: memref<1x!tpu.dma_semaphore, #tpu.memory_space<semaphore_mem>>) attributes {dimension_semantics = [#tpu.dimension_semantics<parallel>, #tpu.dimension_semantics<parallel>], iteration_bounds = array<i64: 2, 2>, scalar_prefetch = 0 : i64, scratch_operands = 2 : i64, tpu.core_type = #tpu.core_type<tc>, window_params = [{pipeline_mode = #tpu.pipeline_mode<synchronous>, transform_indices = @transform_0, window_bounds = array<i64: 5, 20, 128>}, {pipeline_mode = #tpu.pipeline_mode<synchronous>, transform_indices = @transform_1, window_bounds = array<i64: 1, 128>}, {}, {transform_indices = @transform_3, window_bounds = array<i64: 1, 8, 128>}]} {
    %c20_i32 = arith.constant 20 : i32
    %0 = arith.muli %arg0, %c20_i32 : i32
    %c8_i32 = arith.constant 8 : i32
    %1 = arith.muli %arg1, %c8_i32 : i32
    %2 = arith.addi %0, %1 : i32
    %c0_i32 = arith.constant 0 : i32
    %c0_i32_0 = arith.constant 0 : i32
    %3 = tpu.memref_slice %arg4[%2, %c0_i32_0] : memref<40x20xf32, #tpu.memory_space<any>> -> memref<12x20xf32, #tpu.memory_space<any>>
    %4 = tpu.memref_slice %arg7[%c0_i32] : memref<1x!tpu.dma_semaphore, #tpu.memory_space<semaphore_mem>> -> memref<1x!tpu.dma_semaphore, #tpu.memory_space<semaphore_mem>>
    %5 = tpu.memref_squeeze %4 : memref<1x!tpu.dma_semaphore, #tpu.memory_space<semaphore_mem>> -> memref<!tpu.dma_semaphore, #tpu.memory_space<semaphore_mem>>
    tpu.enqueue_dma source(%3 : memref<12x20xf32, #tpu.memory_space<any>>) target(%arg6 : memref<12x20xf32, #tpu.memory_space<vmem>>) target_semaphore(%5 : memref<!tpu.dma_semaphore, #tpu.memory_space<semaphore_mem>>)
    %c0_i32_1 = arith.constant 0 : i32
    %c0_i32_2 = arith.constant 0 : i32
    %6 = tpu.memref_slice %arg4[%2, %c0_i32_2] : memref<40x20xf32, #tpu.memory_space<any>> -> memref<12x20xf32, #tpu.memory_space<any>>
    %7 = tpu.memref_slice %arg7[%c0_i32_1] : memref<1x!tpu.dma_semaphore, #tpu.memory_space<semaphore_mem>> -> memref<1x!tpu.dma_semaphore, #tpu.memory_space<semaphore_mem>>
    %8 = tpu.memref_squeeze %7 : memref<1x!tpu.dma_semaphore, #tpu.memory_space<semaphore_mem>> -> memref<!tpu.dma_semaphore, #tpu.memory_space<semaphore_mem>>
    tpu.wait_dma2 semaphore(%8 : memref<!tpu.dma_semaphore, #tpu.memory_space<semaphore_mem>>) src(%6 : memref<12x20xf32, #tpu.memory_space<any>>) dst(%arg6 : memref<12x20xf32, #tpu.memory_space<vmem>>)
    %c0 = arith.constant 0 : index
    %c0_3 = arith.constant 0 : index
    %9 = vector.load %arg6[%c0, %c0_3] : memref<12x20xf32, #tpu.memory_space<vmem>>, vector<12x20xf32>
    %10 = vector.extract_strided_slice %9 {offsets = [0, 0], sizes = [8, 20], strides = [1, 1]} : vector<12x20xf32> to vector<8x20xf32>
    %c0_4 = arith.constant 0 : index
    %c0_5 = arith.constant 0 : index
    %c0_6 = arith.constant 0 : index
    %11 = vector.load %arg2[%c0_4, %c0_5, %c0_6] : memref<5x20x128xf32, #tpu.memory_space<vmem>>, vector<1x20x128xf32>
    %12 = vector.shape_cast %11 : vector<1x20x128xf32> to vector<20x128xf32>
    %cst = arith.constant dense<0.000000e+00> : vector<8x128xf32>
    %13 = tpu.matmul %10, %12, %cst {dimension_numbers = #tpu.dot_dimension_numbers<[1], [0], [0], [1], [0, 0, 1, 1], [], []>} : vector<8x20xf32>, vector<20x128xf32>, vector<8x128xf32> -> vector<8x128xf32>
    %14 = vector.extract_strided_slice %9 {offsets = [1, 0], sizes = [8, 20], strides = [1, 1]} : vector<12x20xf32> to vector<8x20xf32>
    %c1 = arith.constant 1 : index
    %c0_7 = arith.constant 0 : index
    %c0_8 = arith.constant 0 : index
    %15 = vector.load %arg2[%c1, %c0_7, %c0_8] : memref<5x20x128xf32, #tpu.memory_space<vmem>>, vector<1x20x128xf32>
    %16 = vector.shape_cast %15 : vector<1x20x128xf32> to vector<20x128xf32>
    %cst_9 = arith.constant dense<0.000000e+00> : vector<8x128xf32>
    %17 = tpu.matmul %14, %16, %cst_9 {dimension_numbers = #tpu.dot_dimension_numbers<[1], [0], [0], [1], [0, 0, 1, 1], [], []>} : vector<8x20xf32>, vector<20x128xf32>, vector<8x128xf32> -> vector<8x128xf32>
    %18 = arith.addf %13, %17 : vector<8x128xf32>
    %19 = vector.extract_strided_slice %9 {offsets = [2, 0], sizes = [8, 20], strides = [1, 1]} : vector<12x20xf32> to vector<8x20xf32>
    %c2 = arith.constant 2 : index
    %c0_10 = arith.constant 0 : index
    %c0_11 = arith.constant 0 : index
    %20 = vector.load %arg2[%c2, %c0_10, %c0_11] : memref<5x20x128xf32, #tpu.memory_space<vmem>>, vector<1x20x128xf32>
    %21 = vector.shape_cast %20 : vector<1x20x128xf32> to vector<20x128xf32>
    %cst_12 = arith.constant dense<0.000000e+00> : vector<8x128xf32>
    %22 = tpu.matmul %19, %21, %cst_12 {dimension_numbers = #tpu.dot_dimension_numbers<[1], [0], [0], [1], [0, 0, 1, 1], [], []>} : vector<8x20xf32>, vector<20x128xf32>, vector<8x128xf32> -> vector<8x128xf32>
    %23 = arith.addf %18, %22 : vector<8x128xf32>
    %24 = vector.extract_strided_slice %9 {offsets = [3, 0], sizes = [8, 20], strides = [1, 1]} : vector<12x20xf32> to vector<8x20xf32>
    %c3 = arith.constant 3 : index
    %c0_13 = arith.constant 0 : index
    %c0_14 = arith.constant 0 : index
    %25 = vector.load %arg2[%c3, %c0_13, %c0_14] : memref<5x20x128xf32, #tpu.memory_space<vmem>>, vector<1x20x128xf32>
    %26 = vector.shape_cast %25 : vector<1x20x128xf32> to vector<20x128xf32>
    %cst_15 = arith.constant dense<0.000000e+00> : vector<8x128xf32>
    %27 = tpu.matmul %24, %26, %cst_15 {dimension_numbers = #tpu.dot_dimension_numbers<[1], [0], [0], [1], [0, 0, 1, 1], [], []>} : vector<8x20xf32>, vector<20x128xf32>, vector<8x128xf32> -> vector<8x128xf32>
    %28 = arith.addf %23, %27 : vector<8x128xf32>
    %29 = vector.extract_strided_slice %9 {offsets = [4, 0], sizes = [8, 20], strides = [1, 1]} : vector<12x20xf32> to vector<8x20xf32>
    %c4 = arith.constant 4 : index
    %c0_16 = arith.constant 0 : index
    %c0_17 = arith.constant 0 : index
    %30 = vector.load %arg2[%c4, %c0_16, %c0_17] : memref<5x20x128xf32, #tpu.memory_space<vmem>>, vector<1x20x128xf32>
    %31 = vector.shape_cast %30 : vector<1x20x128xf32> to vector<20x128xf32>
    %cst_18 = arith.constant dense<0.000000e+00> : vector<8x128xf32>
    %32 = tpu.matmul %29, %31, %cst_18 {dimension_numbers = #tpu.dot_dimension_numbers<[1], [0], [0], [1], [0, 0, 1, 1], [], []>} : vector<8x20xf32>, vector<20x128xf32>, vector<8x128xf32> -> vector<8x128xf32>
    %33 = arith.addf %28, %32 : vector<8x128xf32>
    %c0_19 = arith.constant 0 : index
    %c0_20 = arith.constant 0 : index
    %34 = vector.load %arg3[%c0_19, %c0_20] : memref<1x128xf32, #tpu.memory_space<vmem>>, vector<1x128xf32>
    %35 = vector.broadcast %34 : vector<1x128xf32> to vector<8x128xf32>
    %36 = arith.addf %33, %35 : vector<8x128xf32>
    %c0_21 = arith.constant 0 : index
    %c0_22 = arith.constant 0 : index
    %c0_23 = arith.constant 0 : index
    %37 = vector.load %arg5[%c0_21, %c0_22, %c0_23] : memref<1x8x128xf32, #tpu.memory_space<vmem>>, vector<1x8x128xf32>
    %38 = vector.shape_cast %37 : vector<1x8x128xf32> to vector<8x128xf32>
    %39 = vector.shape_cast %36 : vector<8x128xf32> to vector<1x8x128xf32>
    tpu.vector_store %arg5[%c0_21, %c0_22, %c0_23], %39 {strides = array<i32>} : memref<1x8x128xf32, #tpu.memory_space<vmem>>, vector<1x8x128xf32>,
    return
  }
  func.func @transform_0(%arg0: i32, %arg1: i32) -> (i32, i32, i32) {
    %c0_i32 = arith.constant 0 : i32
    %c0_i32_0 = arith.constant 0 : i32
    %c0_i32_1 = arith.constant 0 : i32
    %c0_i32_2 = arith.constant 0 : i32
    return %c0_i32, %c0_i32_0, %c0_i32_1 : i32, i32, i32
  }
  func.func @transform_1(%arg0: i32, %arg1: i32) -> (i32, i32) {
    %c0_i32 = arith.constant 0 : i32
    %c0_i32_0 = arith.constant 0 : i32
    %c0_i32_1 = arith.constant 0 : i32
    return %c0_i32, %c0_i32_0 : i32, i32
  }
  func.func @transform_3(%arg0: i32, %arg1: i32) -> (i32, i32, i32) {
    %c0_i32 = arith.constant 0 : i32
    %c0_i32_0 = arith.constant 0 : i32
    return %arg0, %arg1, %c0_i32 : i32, i32, i32
  }
}

</mosaic_0001>

<bundles_post_ra>
// kernel: tpu_custom_call.1
= control target key start
LH: loop header
LB: loop body
LE: loop exit
PB: predicated region body
PF: predicated region fallthrough
CT: control target
= control target key end

     0   :  { %8 = vsyncpa [#allocation5], 0  ;;  %s1315_s0 = inlined_call_operand.hbm [shape: f32[5,20,128], index: 0, kind: input, shape index: {}]   ;;  %s1316_s1 = inlined_call_operand.vmem [shape: f32[1,128], index: 1, kind: input, shape index: {}]   ;;  %s1317_s2 = inlined_call_operand.vmem [shape: f32[40,20], index: 2, kind: input, shape index: {}]   ;;  %s1318_s3 = inlined_call_operand.hbm [shape: f32[2,16,128], index: 3, kind: output, shape index: {}]  }
   0x1   :  { %9 = vsyncpa [#allocation6], 0 }
   0x2   :  { %11 = vsyncpa [#allocation6 + $0x1], 0  ;;  %s1102_s12 = smov 0   ;;  %s1104_s13 = smov 0  }
   0x3   :  { %s1106_s14 = smov 0   ;;  %s1108_s15 = smov 0  }
   0x4   :  { %s1110_s16 = smov 0   ;;  %s1112_s17 = smov 0  }
   0x5   :  { %s1114_s18 = smov 0   ;;  %s1116_s19 = smov 0  }
   0x6 LB: > { %s752_s20 = sadd.s32 4294967295, %s1073_s19   ;;  %s753_s21 = sadd.s32 4294967294, %s1073_s19   ;;  %s1073_s19 = sphi %s1116_s19, %s17_s19   ;;  %s1069_s18 = sphi %s1114_s18, %s1338_s18   ;;  %s1065_s17 = sphi %s1112_s17, %s1337_s17   ;;  %s1061_s16 = sphi %s1110_s16, %s1336_s16   ;;  %s1057_s15 = sphi %s1108_s15, %s1335_s15   ;;  %s1053_s14 = sphi %s1106_s14, %s1334_s14   ;;  %s1049_s13 = sphi %s1104_s13, %s1333_s13   ;;  %s1045_s12 = sphi %s1102_s12, %s1332_s12  }
   0x7   : > { %s26_s22 = sadd.s32 1, %s1065_s17  ;;  %s29_s23 = sadd.s32 1, %s1069_s18 }
   0x8   : > { %p27_p0 = scmp.ge.s32.totalorder %s26_s22, 2  ;;  %s80_s24 = sadd.s32 1, %s1053_s14 }
   0x9   : > { %p90_p1 = scmp.ne.s32.totalorder %s1053_s14, %s1049_s13  ;;  %p91_p2 = scmp.eq.s32.totalorder %s752_s20, 3 }
   0xa   : > { %s1340_s22 = smov (%p27_p0, %s26_s22), 0  ;;  %s1342_s23 = smov (!%p27_p0, %s29_s23), %s1069_s18 }
   0xb   : > { %s76_s25 = ssub.s32 %s1065_s17, %s1340_s22  ;;  %p1154_p3 = por %p91_p2, %p90_p1 }
   0xc   : > { %p31_p4 = scmp.ge.s32.totalorder %s1342_s23, 2  ;;  %p96_p5 = scmp.ne.s32.totalorder %s1049_s13, %s1045_s12 }
   0xd   : > { %s1323_s26 = scalar_select %p1154_p3, 1, 0 }
   0xe   : > { %p97_p6 = scmp.eq.s32.totalorder %s753_s21, 3  ;;  %p754_p7 = scmp.ge.s32.totalorder %s1073_s19, 1 }
   0xf   : > { %s1344_s23 = smov (%p31_p4, %s1342_s23), 0  ;;  %p104_p9 = scmp.lt.s32.totalorder %s1073_s19, 5 }
  0x10   : > { %p1163_p8 = por %p97_p6, %p96_p5  ;;  %s75_s28 = ssub.s32 %s1069_s18, %s1344_s23 }
  0x11   : > { %s77_s29 = sor.u32 %s76_s25, %s75_s28  ;;  %p1170_p10 = pnand %p754_p7, %p104_p9 }
  0x12   : > { %s1324_s27 = scalar_select %p1163_p8, 1, 0 }
  0x13   : > { %s1325_s30 = scalar_select %p1170_p10, 1, 0 }
  0x14   : > { %p78_p11 = scmp.eq.s32.totalorder %s77_s29, 0  ;;  %p1174_p12 = scmp.eq.s32.totalorder %s752_s20, 0 }
  0x15   : > { %p864_p13 = pneg %p1170_p10  ;;  %s1075_s6 = smov [#allocation4]  }
  0x16   : > { %s1326_s4 = scalar_select %p1174_p12, 1, 0 }
  0x17   : > { %s1181_s5 = scalar_select %p78_p11, %s1053_s14, %s80_s24  }
  0x18   : > { %s116_s7 = sshll.u32 %s1075_s6, 4  ;;  %p1185_p0 = pnand %p1174_p12, %p864_p13  ;;  %s117_s7 = int_to_ptr.vmem [resolvable:$true] %s116_s7 }
  0x19   : > { %s945_s11 = scalar_lea.hbm %s1315_s0, 1920 }
  0x1a   : > { %p946_p1 = scmp.ne.s32.totalorder %s1315_s0, %s945_s11  ;;  %p947_p2 = pneg %p1185_p0 }
  0x1b   : > { %p952_p6 = scmp.lt.u32.totalorder %s945_s11, %s1315_s0 }
  0x1c   : > { %p948_p4 = pnand %p947_p2, %p946_p1 }
  0x1e   : > { %p949_p5 = pneg %p948_p4 }
  0x20   : > { %p954_p7 = pnand %p952_p6, %p949_p5 }
  0x22   : > { %957 = shalt.err (!%p954_p7)
}
  0x23   : > { %s958_s28 = scalar_lea.vmem %s117_s7, 1920  ;;  %p966_p8 = scmp.lt.s32.totalorder %s117_s7, %s117_s7 }
  0x24   : > { %p959_p9 = scmp.ne.s32.totalorder %s117_s7, %s958_s28  ;;  %p967_p3 = scmp.lt.s32.totalorder %s958_s28, %s958_s28 }
  0x26   : > { %p961_p11 = pnand %p959_p9, %p947_p2  ;;  %p968_p12 = por %p967_p3, %p966_p8 }
  0x28   : > { %p962_p13 = pneg %p961_p11 }
  0x2a   : > { %p969_p10 = pnand %p968_p12, %p962_p13 }
  0x2c   : > { %972 = shalt.err (!%p969_p10)
}
  0x2d   : > { %s1076_s29 = smov 128   ;;  %s1077_s6 = smov 8  }
  0x2e   : > { %867 = dma.hbm_to_vmem [thread:$0]  (!%p1185_p0), %s1315_s0, 1920, %s117_s7, [#allocation5], %s1076_s29, %s1076_s29, %s1077_s6  }
  0x2f   : > { %p1328_p1 = scmp.ne.s32.totalorder %s1325_s30, 0 }
  0x30   : > { %p1329_p4 = scmp.ne.s32.totalorder (!%p1328_p1), %s1326_s4, 0 }
  0x31   : > { %135 = sbr.rel (%p1328_p1) target bundleno = 317 (0x13d), region = 28 }
  0x38   : > { %1034 = dma.done.wait (%p1329_p4), [#allocation5], 1920  }
  0x39   : > { %1036 = vsyncadd (%p1329_p4), [#allocation5], 4294965376  ;;  %s149_s11 = sand.u32 1, %s1049_s13   ;;  %s152_s20 = smul.u32 20, %s1061_s16 }
  0x3a   : > { %s1215_s8 = sshll.u32 %s149_s11, 3  ;;  %s759_s7 = sshll.u32 %s1057_s15, 3 }
  0x3b   : > { %s154_s21 = sadd.s32 %s759_s7, %s152_s20  ;;  %s151_s4 = scalar_lea.vmem [#allocation7], %s1215_s8 }
  0x3c   : > { %s155_s25 = scalar_lea.vmem %s1317_s2, %s154_s21 }
  0x3d   : > { %v193_v0 = vld [vmem:[%s155_s25] sm:$0xff]  ;;  %v760_v1 = vld [vmem:[%s155_s25 + $0x8] sm:$0xf] }
  0x3e   : > { %194 = vst [vmem:[#allocation2] sm:$0xff] %v193_v0  ;;  %205 = vst [vmem:[#allocation2 + $0x8] sm:$0xf] %v760_v1 }
  0x3f   : > { %209 = vsyncadd [#allocation3], 192 }
  0x40   : > { %1037 = dma.done.wait [#allocation3], 192 }
  0x41   : > { %1038 = vsyncadd [#allocation3], 4294967104  ;;  %v1078_v2 = vmov 0.0|0.0   ;;  %vm1079_vm0 = vmmov 0   ;;  %v1080_v3 = vmov 0.0   ;;  %v219_v4 = vld [vmem:[#allocation4 + $0x18] sm:$0xff] }
  0x42   : > { %843 = vmatprep.subr.bf16.mxu0 %v1078_v2  ;;  %846 = vmatprep.subr.bf16.mxu1 %v1078_v2  ;;  %v220_v5 = vld [vmem:[#allocation4 + $0x20] sm:$0xff]  ;;  %v216_v8 = vld [vmem:[#allocation4 + $0x8] sm:$0xff]  ;;  %vm224_vm1 = vcmask 1046528   ;;  %v381_v14 = vld [vmem:[#allocation4 + $0x30] sm:$0xff]  ;;  %vm231_vm2 = vcmask 1043456   ;;  %vm228_vm3 = vcmask 162816  }
  0x43   : > { %804 = vmatprep.mubr.msk.f32.mxu0 %vm1079_vm0, %v1080_v3  ;;  %813 = vmatprep.mubr.msk.f32.mxu1 %vm1079_vm0, %v1080_v3  ;;  %v215_v6 = vld [vmem:[#allocation4] sm:$0xff]  ;;  %v844_v7 = vpack.c.bf16 %v220_v5, %v219_v4  ;;  %v382_v15 = vld [vmem:[#allocation4 + $0x38] sm:$0xff]  ;;  %v221_v16 = vld [vmem:[#allocation4 + $0x28] sm:$0xf]  ;;  %vm384_vm4 = vcmask 1045504   ;;  %vm468_vm5 = vcmask 1044480  }
  0x44   : > { %v847_v10 = vpack.c.bf16 %v216_v8, %v215_v6  ;;  %v465_v17 = vld [vmem:[#allocation4 + $0x48] sm:$0xff]  ;;  %v466_v18 = vld [vmem:[#allocation4 + $0x50] sm:$0xff]  ;;  %v850_v21 = vpack.c.bf16 %v382_v15, %v381_v14  ;;  %v549_v25 = vld [vmem:[#allocation4 + $0x60] sm:$0xff]  ;;  %s773_s28 = sshll.u32 %s1061_s16, 1  ;;  %s656_s20 = sshll.u32 %s151_s4, 4  ;;  %s1260_s20 = int_to_ptr.vmem [resolvable:$true] %s656_s20 }
  0x45   : > { %v213_v9 = vld [vmem:[#allocation2] sm:$0xff]  ;;  %v214_v11 = vld [vmem:[#allocation2 + $0x8] sm:$0xf]  ;;  %845 = vmatpush3.bf16.msra.mxu0 %v844_v7  ;;  %v853_v22 = vpack.c.bf16 %v466_v18, %v465_v17  ;;  %v550_v26 = vld [vmem:[#allocation4 + $0x68] sm:$0xff]  ;;  %s652_s29 = sadd.s32 %s1057_s15, %s773_s28  ;;  %s641_s15 = scalar_lea.sflag [#allocation6], %s149_s11 }
  0x46   : > { %v225_v12 = vrot.slane %v213_v9, 1  ;;  %v226_v13 = vrot.slane %v214_v11, 1  ;;  %848 = vmatpush3.bf16.msra.mxu1 %v847_v10  ;;  %802 = vmatprep.subr.mxu0 %v1080_v3  ;;  %v217_v20 = vld [vmem:[#allocation4 + $0x10] sm:$0xf]  ;;  %v385_v23 = vrot.slane %v213_v9, 2  ;;  %v386_v24 = vrot.slane %v214_v11, 2 }
  0x47   : > { %811 = vmatprep.subr.mxu1 %v1080_v3  ;;  %v469_v27 = vrot.slane %v213_v9, 3  ;;  %v470_v28 = vrot.slane %v214_v11, 3  ;;  %v383_v29 = vld [vmem:[#allocation4 + $0x40] sm:$0xf]  ;;  %v856_v31 = vpack.c.bf16 %v550_v26, %v549_v25  ;;  %v467_v32 = vld [vmem:[#allocation4 + $0x58] sm:$0xf] }
  0x48   : > { %v227_v19 = vsel %vm224_vm1, %v225_v12, %v226_v13  ;;  %v387_v30 = vsel %vm384_vm4, %v385_v23, %v386_v24  ;;  %v552_v34 = vrot.slane %v213_v9, 4  ;;  %v553_v35 = vrot.slane %v214_v11, 4  ;;  %v551_v36 = vld [vmem:[#allocation4 + $0x70] sm:$0xf]  ;;  %s774_s10 = sshll.u32 %s652_s29, 7  ;;  %s973_s30 = scalar_lea.vmem %s1260_s20, 128 }
  0x49   : > { %803 = vmatpush3.msk.msra.mxu0 %vm231_vm2, %v221_v16  ;;  %v471_v33 = vsel %vm468_vm5, %v469_v27, %v470_v28  ;;  %v771_v50 = vld [vmem:[%s1316_s1] ss:$0 sm:$0xff]  ;;  %s1258_s21 = scalar_lea.hbm %s1318_s3, %s774_s10  ;;  %p974_p3 = scmp.ne.s32.totalorder %s1260_s20, %s973_s30 }
  0x4a   : > { %805 = vmatmul.mubr.msk.f32.vlgmr.msra.gmra.mrb[0].mxu0 %vm228_vm3, %v227_v19  ;;  %812 = vmatpush3.msk.msra.mxu1 %vm231_vm2, %v217_v20  ;;  %v554_v37 = vsel %vm231_vm2, %v552_v34, %v553_v35  ;;  %p1330_p8 = scmp.ne.s32.totalorder %s1323_s26, 0  ;;  %s1081_s24 = smov [#allocation7]  }
  0x4b   : > { %849 = vmatprep.subr.bf16.mxu0 %v1078_v2  ;;  %814 = vmatmul.mubr.msk.f32.vlgmr.msra.gmra.mrb[0].mxu1 %vm228_vm3, %v213_v9  ;;  %s977_s25 = sshll.u32 %s1081_s24, 4  ;;  %s978_s25 = int_to_ptr.vmem [resolvable:$false] %s977_s25 }
  0x4c   : > { %851 = vmatpush3.bf16.msra.mxu0 %v850_v21  ;;  %852 = vmatprep.subr.bf16.mxu1 %v1078_v2  ;;  %p975_p10 = pnand %p974_p3, %p1330_p8  ;;  %s979_s28 = scalar_lea.vmem %s978_s25, 256 }
  0x4d   : > { %854 = vmatpush3.bf16.msra.mxu1 %v853_v22  ;;  %820 = vmatprep.subr.mxu0 %v1080_v3  ;;  %p980_p0 = scmp.lt.s32.totalorder %s1260_s20, %s978_s25  ;;  %p981_p2 = scmp.lt.s32.totalorder %s979_s28, %s973_s30 }
  0x4e   : > { %822 = vmatprep.mubr.msk.f32.mxu0 %vm1079_vm0, %v1080_v3  ;;  %829 = vmatprep.subr.mxu1 %v1080_v3  ;;  %p976_p12 = pneg %p975_p10 }
  0x4f   : > { %831 = vmatprep.mubr.msk.f32.mxu1 %vm1079_vm0, %v1080_v3  ;;  %p982_p5 = por %p981_p2, %p980_p0 }
  0x50   : > { %821 = vmatpush3.msk.msra.mxu0 %vm231_vm2, %v383_v29 }
  0x51   : > { %823 = vmatmul.mubr.msk.f32.vlgmr.msra.gmra.mrb[2].mxu0 %vm228_vm3, %v387_v30  ;;  %855 = vmatprep.subr.bf16.mxu0 %v1078_v2  ;;  %p983_p6 = pnand %p982_p5, %p976_p12 }
  0x52   : > { %830 = vmatpush3.msk.msra.mxu1 %vm231_vm2, %v467_v32  ;;  %857 = vmatpush3.bf16.msra.mxu0 %v856_v31 }
  0x53   : > { %832 = vmatmul.mubr.msk.f32.vlgmr.msra.gmra.mrb[2].mxu1 %vm228_vm3, %v471_v33  ;;  %838 = vmatprep.subr.mxu0 %v1080_v3 }
  0x54   : > { %840 = vmatprep.mubr.msk.f32.mxu0 %vm1079_vm0, %v1080_v3 }
  0x56   : > { %839 = vmatpush3.msk.msra.mxu0 %vm231_vm2, %v551_v36 }
  0x57   : > { %841 = vmatmul.mubr.msk.f32.vlgmr.msra.gmra.mrb[4].mxu0 %vm228_vm3, %v554_v37 }
 0x11d   : > { %v301_v38 = vpop.f32.mrb[0].mxu0 }
 0x11e   : > { %v806_v39 = vpop.f32.mrb[1].mxu0  ;;  %v376_v40 = vpop.f32.mrb[0].mxu1 }
 0x11f   : > { %v377_v41 = vadd.f32 %v376_v40, %v301_v38  ;;  %v815_v42 = vpop.f32.mrb[1].mxu1 }
 0x124   : > { %v459_v43 = vpop.f32.mrb[2].mxu0 }
 0x125   : > { %v463_v44 = vadd.f32 %v459_v43, %v377_v41  ;;  %v824_v45 = vpop.f32.mrb[3].mxu0 }
 0x126   : > { %v543_v46 = vpop.f32.mrb[2].mxu1 }
 0x127   : > { %v547_v47 = vadd.f32 %v543_v46, %v463_v44  ;;  %v833_v48 = vpop.f32.mrb[3].mxu1 }
 0x12a   : > { %v626_v49 = vpop.f32.mrb[4].mxu0 }
 0x12b   : > { %v630_v51 = vadd.f32 %v626_v49, %v547_v47  ;;  %v842_v52 = vpop.f32.mrb[5].mxu0 }
 0x12d   : > { %v638_v53 = vadd.f32 %v771_v50, %v630_v51 }
 0x12f   : > { %639 = vst [vmem:[%s151_s4] sm:$0xff] %v638_v53 }
 0x130   : > { %986 = shalt.err (!%p983_p6)
}
 0x131   : > { %s987_s11 = scalar_lea.hbm %s1258_s21, 128  ;;  %s991_s29 = scalar_lea.hbm %s1318_s3, 512 }
 0x132   : > { %p988_p7 = scmp.ne.s32.totalorder %s1258_s21, %s987_s11  ;;  %p992_p13 = scmp.lt.u32.totalorder %s1258_s21, %s1318_s3 }
 0x133   : > { %p993_p1 = scmp.lt.u32.totalorder %s991_s29, %s987_s11  ;;  %p995_p3 = scmp.lt.u32.totalorder %s987_s11, %s1258_s21 }
 0x134   : > { %p989_p9 = pnand %p988_p7, %p1330_p8 }
 0x135   : > { %p994_p4 = por %p993_p1, %p992_p13 }
 0x136   : > { %p990_p11 = pneg %p989_p9 }
 0x137   : > { %p996_p10 = por %p995_p3, %p994_p4 }
 0x139   : > { %p997_p12 = pnand %p996_p10, %p990_p11 }
 0x13b   : > { %1000 = shalt.err (!%p997_p12)
}
 0x13c   : > { %862 = dma.vmem_to_hbm [thread:$0]  (%p1330_p8), %s1260_s20, 128, %s1258_s21, %s641_s15  }
 0x13d PF: > { %p874_p0 = scmp.ge.s32.totalorder %s1073_s19, 2  ;;  %s668_s10 = sand.u32 1, %s1045_s12  }
 0x13e   : > { %p1331_p2 = scmp.ne.s32.totalorder %s1324_s27, 0  ;;  %s669_s16 = scalar_lea.sflag [#allocation6], %s668_s10 }
 0x140   : > { %p869_p5 = pnand %p874_p0, %p1331_p2 }
 0x142   : > { %1040 = dma.done.wait (!%p869_p5), %s669_s16, 128  }
 0x143   : > { %1042 = vsyncadd (!%p869_p5), %s669_s16, 4294967168  ;;  %s17_s19 = sadd.s32 1, %s1073_s19   ;;  %s1332_s12 = smov %s1049_s13 }
 0x144   : > { %p14_p6 = scmp.ge.s32.totalorder %s17_s19, 6   ;;  %s1333_s13 = smov %s1053_s14 }
 0x145   : > { %s1334_s14 = smov %s1181_s5  ;;  %s1335_s15 = smov %s1065_s17 }
 0x146   : > { %s1336_s16 = smov %s1069_s18  ;;  %s1337_s17 = smov %s1340_s22 }
 0x147   : > { %s1338_s18 = smov %s1344_s23  ;;  %16 = sbr.rel (!%p14_p6) target bundleno = 6 (0x6), region = 121 }
 0x14e   :  { %674 = vsyncpa [#allocation5], 1 }
 0x14f   :  { %676 = vsyncpa [#allocation5 + $0x1], 1 }
 0x150   :  { %677 = vsyncpa [#allocation6], 1 }
 0x151   :  { %679 = vsyncpa [#allocation6 + $0x1], 1 }
 0x152   :  { %680 = vsyncmov [#allocation3] }
 0x155   :  { %s681_s26 = vpop.sfrf %680 }
 0x156   :  { %p777_p8 = scmp.ne.s32.totalorder %s681_s26, 0 }
 0x158   :  { %685 = shalt.err (%p777_p8)  }

</bundles_post_ra>
